<compile_context>
chip_gen: v5e
topology: v5e:2x2
jax: 0.10.0
libtpu: 0.0.40
codegen_flags: <defaults>
</compile_context>

<pallas_src>
import functools
import math

import jax
import jax.numpy as jnp
from jax.experimental import pallas as pl
from jax.experimental.pallas import tpu as pltpu


def _round_up(x: int, m: int) -> int:
    return ((x + m - 1) // m) * m


def _vmem_budget_bytes() -> int:
    """Physical VMEM per core with headroom (generation-aware)."""
    try:
        cap = int(pltpu.get_tpu_info().vmem_capacity_bytes)
    except Exception:  # pragma: no cover - conservative fallback (v7x per-TC)
        cap = 64 * 1024 * 1024
    return cap * 7 // 8  # ~56 MiB on v7x, ~112 MiB on v5e/v6e


def _select_tiles(M, E_pad, d_ff, x_itemsize, w_itemsize, budget, use_acc):
    """Pick (tm, tf) that fit the VMEM budget; returns (tm, tf, est_bytes)."""
    sub = 8 if x_itemsize >= 4 else 16          # sublane granularity
    tm_cap = 256 if x_itemsize >= 4 else 512    # bf16 benefits from 512 (v6e knee)

    if M <= 64:
        # Decode-style tiny M: weight-BW bound everywhere; smallest legal tile.
        tm = _round_up(M, sub)
    else:
        tm = min(tm_cap, _round_up(M, sub))

    tf = min(512, _round_up(d_ff, 128))
    if E_pad >= 4096:
        # v7x-friendly: keep weight chunks small, spend VMEM on tm instead.
        tf = min(tf, 256)

    def vmem_bytes(tm_, tf_):
        v = 2 * tm_ * E_pad * x_itemsize        # x tile (double-buffered)
        v += 2 * E_pad * tf_ * w_itemsize       # w1 chunk
        v += 2 * 8 * tf_ * w_itemsize           # b1 chunk (sublane-padded)
        v += 2 * tf_ * E_pad * w_itemsize       # w2 chunk
        v += 2 * 8 * E_pad * w_itemsize         # b2
        v += 2 * tm_ * E_pad * x_itemsize       # out tile
        if use_acc:
            v += tm_ * E_pad * 4                # f32 accumulator scratch
        return v

    # Big-VMEM chips (v5e/v6e) + moderate E: grow tf to cut accumulator RMW
    # traffic and per-grid-step overhead.
    while (E_pad <= 2048 and tf < 1024 and 2 * tf <= _round_up(d_ff, 128)
           and vmem_bytes(tm, 2 * tf) <= budget):
        tf *= 2
    # Tight VMEM (v7x): shrink tf first (arithmetic intensity is set by tm) ...
    while vmem_bytes(tm, tf) > budget and tf > 128:
        tf = max(128, tf // 2)
    # ... then tm.
    while vmem_bytes(tm, tf) > budget and tm > sub:
        tm = max(sub, _round_up(tm // 2, sub))
    return tm, tf, vmem_bytes(tm, tf)


def _ffn_kernel_acc(x_ref, w1_ref, b1_ref, w2_ref, b2_ref, o_ref, acc_ref):
    """Non-f32 output: accumulate in an f32 scratch, cast at the last f step."""
    f = pl.program_id(1)

    @pl.when(f == 0)
    def _():
        acc_ref[...] = jnp.zeros_like(acc_ref)

    h = jnp.dot(x_ref[...], w1_ref[...], preferred_element_type=jnp.float32)
    h = jnp.maximum(h + b1_ref[...].astype(jnp.float32), 0.0)
    # Dropout: identity at inference.
    acc_ref[...] += jnp.dot(h.astype(w2_ref.dtype), w2_ref[...],
                            preferred_element_type=jnp.float32)

    @pl.when(f == pl.num_programs(1) - 1)
    def _():
        o_ref[...] = (acc_ref[...] + b2_ref[...].astype(jnp.float32)
                      ).astype(o_ref.dtype)


def _ffn_kernel_f32out(x_ref, w1_ref, b1_ref, w2_ref, b2_ref, o_ref):
    """f32 output: accumulate directly into the resident output block."""
    f = pl.program_id(1)

    @pl.when(f == 0)
    def _():
        o_ref[...] = jnp.broadcast_to(b2_ref[...].astype(jnp.float32),
                                      o_ref.shape)

    h = jnp.dot(x_ref[...], w1_ref[...], preferred_element_type=jnp.float32)
    h = jnp.maximum(h + b1_ref[...].astype(jnp.float32), 0.0)
    # Dropout: identity at inference.
    o_ref[...] += jnp.dot(h.astype(w2_ref.dtype), w2_ref[...],
                          preferred_element_type=jnp.float32)


@functools.partial(jax.jit, static_argnames=("tm", "tf"))
def feed_forward_block(x, w1, b1, w2, b2, *, tm=None, tf=None):
    """x: [B, S, E] -> [B, S, E].  Weights are (in_features, out_features)."""
    B, S, E = x.shape
    d_ff = w1.shape[1]
    M = B * S

    x_itemsize = jnp.dtype(x.dtype).itemsize
    w_itemsize = jnp.dtype(w1.dtype).itemsize
    use_acc = x.dtype != jnp.float32
    E_pad = _round_up(E, 128)

    budget = _vmem_budget_bytes()
    tm_auto, tf_auto, vmem_est = _select_tiles(
        M, E_pad, d_ff, x_itemsize, w_itemsize, budget, use_acc)
    tm = tm_auto if tm is None else tm
    tf = tf_auto if tf is None else tf

    M_pad = _round_up(M, tm)
    F_pad = _round_up(d_ff, tf)

    # --- zero-pad only when needed (padded rows/cols contribute nothing) -----
    x2d = x.reshape(M, E)
    if M_pad != M or E_pad != E:
        x2d = jnp.pad(x2d, ((0, M_pad - M), (0, E_pad - E)))
    w1p = w1 if (E_pad == E and F_pad == d_ff) else jnp.pad(
        w1, ((0, E_pad - E), (0, F_pad - d_ff)))
    b1p = (b1 if F_pad == d_ff else jnp.pad(b1, (0, F_pad - d_ff))).reshape(1, F_pad)
    w2p = w2 if (F_pad == d_ff and E_pad == E) else jnp.pad(
        w2, ((0, F_pad - d_ff), (0, E_pad - E)))
    b2p = (b2 if E_pad == E else jnp.pad(b2, (0, E_pad - E))).reshape(1, E_pad)

    grid = (M_pad // tm, F_pad // tf)

    # --- VMEM limit: generation-aware cap, no extra 2x over-reserve ----------
    vmem_limit = int(min(max(vmem_est + (4 << 20), 32 << 20), budget))

    # --- scheduler hint: weights are re-streamed once per row tile -----------
    gi = grid[0]
    w_bytes = (w1p.size * jnp.dtype(w1p.dtype).itemsize
               + b1p.size * jnp.dtype(b1p.dtype).itemsize
               + w2p.size * jnp.dtype(w2p.dtype).itemsize)
    cost = pl.CostEstimate(
        flops=4 * M_pad * E_pad * F_pad,  # two matmuls
        transcendentals=0,
        bytes_accessed=int(
            M_pad * E_pad * x_itemsize                       # x read
            + gi * w_bytes                                   # weights per row tile
            + b2p.size * jnp.dtype(b2p.dtype).itemsize       # b2 (resident)
            + M_pad * E_pad * x_itemsize),                   # output write
    )

    kernel = _ffn_kernel_acc if use_acc else _ffn_kernel_f32out
    scratch = [pltpu.VMEM((tm, E_pad), jnp.float32)] if use_acc else []

    out2d = pl.pallas_call(
        kernel,
        out_shape=jax.ShapeDtypeStruct((M_pad, E_pad), x.dtype),
        grid_spec=pltpu.PrefetchScalarGridSpec(
            num_scalar_prefetch=0,
            grid=grid,
            in_specs=[
                pl.BlockSpec((tm, E_pad), lambda i, f: (i, 0)),   # x row tile
                pl.BlockSpec((E_pad, tf), lambda i, f: (0, f)),   # w1 chunk
                pl.BlockSpec((1, tf), lambda i, f: (0, f)),       # b1 chunk
                pl.BlockSpec((tf, E_pad), lambda i, f: (f, 0)),   # w2 chunk
                pl.BlockSpec((1, E_pad), lambda i, f: (0, 0)),    # b2
            ],
            out_specs=pl.BlockSpec((tm, E_pad), lambda i, f: (i, 0)),
            scratch_shapes=scratch,
        ),
        compiler_params=pltpu.CompilerParams(
            dimension_semantics=("parallel", "arbitrary"),
            vmem_limit_bytes=vmem_limit,
        ),
        cost_estimate=cost,
    )(x2d, w1p, b1p, w2p, b2p)

    if M_pad != M or E_pad != E:
        out2d = out2d[:M, :E]
    return out2d.reshape(B, S, E)


def init_params(key, embed_dim, d_ff, dtype=jnp.float32):
    """Deterministic init mimicking nn.Linear's uniform(-1/sqrt(fan_in), ...)."""
    k1, k2, k3, k4 = jax.random.split(key, 4)
    lim1 = 1.0 / math.sqrt(embed_dim)
    lim2 = 1.0 / math.sqrt(d_ff)
    w1 = jax.random.uniform(k1, (embed_dim, d_ff), dtype, -lim1, lim1)
    b1 = jax.random.uniform(k2, (d_ff,), dtype, -lim1, lim1)
    w2 = jax.random.uniform(k3, (d_ff, embed_dim), dtype, -lim2, lim2)
    b2 = jax.random.uniform(k4, (embed_dim,), dtype, -lim2, lim2)
    return w1, b1, w2, b2


if __name__ == "__main__":
    batch, seq, embed_dim, d_ff = 2, 8, 32, 64
    key = jax.random.PRNGKey(0)
    kx, kp = jax.random.split(key)

    x = jax.random.normal(kx, (batch, seq, embed_dim), jnp.float32)
    w1, b1, w2, b2 = init_params(kp, embed_dim, d_ff)

    # f32 path (direct-output accumulation, no scratch)
    out = jax.block_until_ready(feed_forward_block(x, w1, b1, w2, b2))

    ref = jnp.maximum(x.reshape(-1, embed_dim) @ w1 + b1, 0.0) @ w2 + b2
    ref = ref.reshape(batch, seq, embed_dim)
    assert out.shape == (batch, seq, embed_dim)
    assert jnp.allclose(out, ref, atol=1e-5, rtol=1e-5)

    # bf16 weights/activations, f32 accumulator scratch (looser tolerance:
    # hidden activation is cast to bf16 between the two matmuls by design)
    xb = x.astype(jnp.bfloat16)
    w1b, b1b, w2b, b2b = (t.astype(jnp.bfloat16) for t in (w1, b1, w2, b2))
    outb = jax.block_until_ready(feed_forward_block(xb, w1b, b1b, w2b, b2b))
    assert outb.dtype == jnp.bfloat16
    assert jnp.allclose(outb.astype(jnp.float32), ref, atol=5e-2, rtol=5e-2)

    print("KERNEL_OK")
</pallas_src>

<mosaic_0001>
module attributes {stable_mosaic.version = 11 : i64} {
  func.func @_ffn_kernel_f32out(%arg0: i32, %arg1: i32, %arg2: memref<16x128xf32, #tpu.memory_space<vmem>>, %arg3: memref<128x128xf32, #tpu.memory_space<vmem>>, %arg4: memref<1x128xf32, #tpu.memory_space<vmem>>, %arg5: memref<128x128xf32, #tpu.memory_space<vmem>>, %arg6: memref<1x128xf32, #tpu.memory_space<vmem>>, %arg7: memref<16x128xf32, #tpu.memory_space<vmem>>) attributes {dimension_semantics = [#tpu.dimension_semantics<parallel>, #tpu.dimension_semantics<arbitrary>], iteration_bounds = array<i64: 1, 1>, scalar_prefetch = 0 : i64, scratch_operands = 0 : i64, tpu.core_type = #tpu.core_type<tc>, window_params = [{transform_indices = @transform_0, window_bounds = array<i64: 16, 128>}, {transform_indices = @transform_1, window_bounds = array<i64: 128, 128>}, {transform_indices = @transform_2, window_bounds = array<i64: 1, 128>}, {transform_indices = @transform_3, window_bounds = array<i64: 128, 128>}, {pipeline_mode = #tpu.pipeline_mode<synchronous>, transform_indices = @transform_4, window_bounds = array<i64: 1, 128>}, {transform_indices = @transform_5, window_bounds = array<i64: 16, 128>}]} {
    %c0_i32 = arith.constant 0 : i32
    %0 = arith.cmpi eq, %arg1, %c0_i32 : i32
    %1 = arith.extui %0 : i1 to i32
    %c0_i32_0 = arith.constant 0 : i32
    %2 = arith.cmpi ne, %1, %c0_i32_0 : i32
    scf.if %2 {
      %c0_14 = arith.constant 0 : index
      %c0_15 = arith.constant 0 : index
      %16 = vector.load %arg6[%c0_14, %c0_15] : memref<1x128xf32, #tpu.memory_space<vmem>>, vector<1x128xf32>
      %17 = vector.shape_cast %16 : vector<1x128xf32> to vector<1x128xf32>
      %18 = vector.broadcast %17 : vector<1x128xf32> to vector<16x128xf32>
      %c0_16 = arith.constant 0 : index
      %c0_17 = arith.constant 0 : index
      %19 = vector.load %arg7[%c0_16, %c0_17] : memref<16x128xf32, #tpu.memory_space<vmem>>, vector<16x128xf32>
      tpu.vector_store %arg7[%c0_16, %c0_17], %18 {strides = array<i32>} : memref<16x128xf32, #tpu.memory_space<vmem>>, vector<16x128xf32>,
    } else {
    }
    %c0 = arith.constant 0 : index
    %c0_1 = arith.constant 0 : index
    %3 = vector.load %arg2[%c0, %c0_1] : memref<16x128xf32, #tpu.memory_space<vmem>>, vector<16x128xf32>
    %c0_2 = arith.constant 0 : index
    %c0_3 = arith.constant 0 : index
    %4 = vector.load %arg3[%c0_2, %c0_3] : memref<128x128xf32, #tpu.memory_space<vmem>>, vector<128x128xf32>
    %cst = arith.constant dense<0.000000e+00> : vector<16x128xf32>
    %5 = tpu.matmul %3, %4, %cst {dimension_numbers = #tpu.dot_dimension_numbers<[1], [0], [0], [1], [0, 0, 1, 1], [], []>} : vector<16x128xf32>, vector<128x128xf32>, vector<16x128xf32> -> vector<16x128xf32>
    %c0_4 = arith.constant 0 : index
    %c0_5 = arith.constant 0 : index
    %6 = vector.load %arg4[%c0_4, %c0_5] : memref<1x128xf32, #tpu.memory_space<vmem>>, vector<1x128xf32>
    %7 = vector.broadcast %6 : vector<1x128xf32> to vector<16x128xf32>
    %8 = arith.addf %5, %7 : vector<16x128xf32>
    %cst_6 = arith.constant 0.000000e+00 : f32
    %9 = vector.broadcast %cst_6 : f32 to vector<16x128xf32>
    %10 = arith.maximumf %8, %9 : vector<16x128xf32>
    %c0_7 = arith.constant 0 : index
    %c0_8 = arith.constant 0 : index
    %11 = vector.load %arg7[%c0_7, %c0_8] : memref<16x128xf32, #tpu.memory_space<vmem>>, vector<16x128xf32>
    %c0_9 = arith.constant 0 : index
    %c0_10 = arith.constant 0 : index
    %12 = vector.load %arg5[%c0_9, %c0_10] : memref<128x128xf32, #tpu.memory_space<vmem>>, vector<128x128xf32>
    %cst_11 = arith.constant dense<0.000000e+00> : vector<16x128xf32>
    %13 = tpu.matmul %10, %12, %cst_11 {dimension_numbers = #tpu.dot_dimension_numbers<[1], [0], [0], [1], [0, 0, 1, 1], [], []>} : vector<16x128xf32>, vector<128x128xf32>, vector<16x128xf32> -> vector<16x128xf32>
    %14 = arith.addf %11, %13 : vector<16x128xf32>
    %c0_12 = arith.constant 0 : index
    %c0_13 = arith.constant 0 : index
    %15 = vector.load %arg7[%c0_12, %c0_13] : memref<16x128xf32, #tpu.memory_space<vmem>>, vector<16x128xf32>
    tpu.vector_store %arg7[%c0_12, %c0_13], %14 {strides = array<i32>} : memref<16x128xf32, #tpu.memory_space<vmem>>, vector<16x128xf32>,
    return
  }
  func.func @transform_0(%arg0: i32, %arg1: i32) -> (i32, i32) {
    %c0_i32 = arith.constant 0 : i32
    %c0_i32_0 = arith.constant 0 : i32
    return %arg0, %c0_i32 : i32, i32
  }
  func.func @transform_1(%arg0: i32, %arg1: i32) -> (i32, i32) {
    %c0_i32 = arith.constant 0 : i32
    %c0_i32_0 = arith.constant 0 : i32
    return %c0_i32, %arg1 : i32, i32
  }
  func.func @transform_2(%arg0: i32, %arg1: i32) -> (i32, i32) {
    %c0_i32 = arith.constant 0 : i32
    %c0_i32_0 = arith.constant 0 : i32
    return %c0_i32, %arg1 : i32, i32
  }
  func.func @transform_3(%arg0: i32, %arg1: i32) -> (i32, i32) {
    %c0_i32 = arith.constant 0 : i32
    %c0_i32_0 = arith.constant 0 : i32
    return %arg1, %c0_i32 : i32, i32
  }
  func.func @transform_4(%arg0: i32, %arg1: i32) -> (i32, i32) {
    %c0_i32 = arith.constant 0 : i32
    %c0_i32_0 = arith.constant 0 : i32
    %c0_i32_1 = arith.constant 0 : i32
    return %c0_i32, %c0_i32_0 : i32, i32
  }
  func.func @transform_5(%arg0: i32, %arg1: i32) -> (i32, i32) {
    %c0_i32 = arith.constant 0 : i32
    %c0_i32_0 = arith.constant 0 : i32
    return %arg0, %c0_i32 : i32, i32
  }
}

</mosaic_0001>

<bundles_post_ra>
// kernel: feed_forward_block.1
= control target key start
LH: loop header
LB: loop body
LE: loop exit
PB: predicated region body
PF: predicated region fallthrough
CT: control target
= control target key end

     0   :  { %s304_s1 = inlined_call_operand.vmem [shape: f32[128,128], index: 1, kind: input, shape index: {}]   ;;  %s305_s3 = inlined_call_operand.vmem [shape: f32[128,128], index: 3, kind: input, shape index: {}]   ;;  %s306_s2 = inlined_call_operand.vmem [shape: f32[1,128], index: 2, kind: input, shape index: {}]   ;;  %s307_s0 = inlined_call_operand.vmem [shape: f32[16,128], index: 0, kind: input, shape index: {}]   ;;  %s308_s4 = inlined_call_operand.vmem [shape: f32[1,128], index: 4, kind: input, shape index: {}]   ;;  %s309_s5 = inlined_call_operand.vmem [shape: f32[16,128], index: 5, kind: output, shape index: {}]  }
   0x1   :  { %v47_v0 = vld [vmem:[%s304_s1 + $0x78] sm:$0xff]  ;;  %v46_v1 = vld [vmem:[%s304_s1 + $0x70] sm:$0xff]  ;;  %v45_v2 = vld [vmem:[%s304_s1 + $0x68] sm:$0xff] }
   0x2   :  { %126 = vmatpush.msra.mxu2 %v47_v0  ;;  %52 = vmatpush.msra.mxu0 %v47_v0  ;;  %v44_v3 = vld [vmem:[%s304_s1 + $0x60] sm:$0xff]  ;;  %v43_v4 = vld [vmem:[%s304_s1 + $0x58] sm:$0xff]  ;;  %v93_v6 = vld [vmem:[%s305_s3 + $0x70] sm:$0xff] }
   0x3   :  { %v94_v5 = vld [vmem:[%s305_s3 + $0x78] sm:$0xff]  ;;  %v42_v7 = vld [vmem:[%s304_s1 + $0x50] sm:$0xff]  ;;  %v92_v8 = vld [vmem:[%s305_s3 + $0x68] sm:$0xff] }
   0x4   :  { %127 = vmatpush.msra.mxu2 %v46_v1  ;;  %53 = vmatpush.msra.mxu0 %v46_v1  ;;  %v41_v9 = vld [vmem:[%s304_s1 + $0x48] sm:$0xff]  ;;  %v91_v10 = vld [vmem:[%s305_s3 + $0x60] sm:$0xff]  ;;  %v90_v12 = vld [vmem:[%s305_s3 + $0x58] sm:$0xff] }
   0x5   :  { %142 = vmatpush.msra.mxu3 %v94_v5  ;;  %95 = vmatpush.msra.mxu1 %v94_v5  ;;  %v40_v11 = vld [vmem:[%s304_s1 + $0x40] sm:$0xff]  ;;  %v39_v13 = vld [vmem:[%s304_s1 + $0x38] sm:$0xff]  ;;  %v89_v14 = vld [vmem:[%s305_s3 + $0x50] sm:$0xff] }
   0x6   :  { %128 = vmatpush.msra.mxu2 %v45_v2  ;;  %54 = vmatpush.msra.mxu0 %v45_v2  ;;  %v38_v15 = vld [vmem:[%s304_s1 + $0x30] sm:$0xff]  ;;  %v88_v16 = vld [vmem:[%s305_s3 + $0x48] sm:$0xff]  ;;  %v87_v18 = vld [vmem:[%s305_s3 + $0x40] sm:$0xff] }
   0x7   :  { %143 = vmatpush.msra.mxu3 %v93_v6  ;;  %96 = vmatpush.msra.mxu1 %v93_v6  ;;  %v37_v17 = vld [vmem:[%s304_s1 + $0x28] sm:$0xff]  ;;  %v36_v19 = vld [vmem:[%s304_s1 + $0x20] sm:$0xff]  ;;  %v86_v20 = vld [vmem:[%s305_s3 + $0x38] sm:$0xff] }
   0x8   :  { %129 = vmatpush.msra.mxu2 %v44_v3  ;;  %55 = vmatpush.msra.mxu0 %v44_v3  ;;  %v35_v21 = vld [vmem:[%s304_s1 + $0x18] sm:$0xff]  ;;  %v85_v22 = vld [vmem:[%s305_s3 + $0x30] sm:$0xff]  ;;  %v84_v24 = vld [vmem:[%s305_s3 + $0x28] sm:$0xff] }
   0x9   :  { %144 = vmatpush.msra.mxu3 %v92_v8  ;;  %97 = vmatpush.msra.mxu1 %v92_v8  ;;  %v34_v23 = vld [vmem:[%s304_s1 + $0x10] sm:$0xff]  ;;  %v33_v25 = vld [vmem:[%s304_s1 + $0x8] sm:$0xff]  ;;  %v83_v26 = vld [vmem:[%s305_s3 + $0x20] sm:$0xff] }
   0xa   :  { %130 = vmatpush.msra.mxu2 %v43_v4  ;;  %56 = vmatpush.msra.mxu0 %v43_v4  ;;  %v32_v27 = vld [vmem:[%s304_s1] sm:$0xff]  ;;  %v31_v28 = vld [vmem:[%s307_s0 + $0x8] sm:$0xff]  ;;  %v82_v30 = vld [vmem:[%s305_s3 + $0x18] sm:$0xff] }
   0xb   :  { %145 = vmatpush.msra.mxu3 %v91_v10  ;;  %98 = vmatpush.msra.mxu1 %v91_v10  ;;  %v30_v29 = vld [vmem:[%s307_s0] sm:$0xff]  ;;  %v81_v31 = vld [vmem:[%s305_s3 + $0x10] sm:$0xff]  ;;  %v80_v32 = vld [vmem:[%s305_s3 + $0x8] sm:$0xff] }
   0xc   :  { %131 = vmatpush.msra.mxu2 %v42_v7  ;;  %57 = vmatpush.msra.mxu0 %v42_v7  ;;  %v79_v33 = vld [vmem:[%s305_s3] sm:$0xff] }
   0xd   :  { %146 = vmatpush.msra.mxu3 %v90_v12  ;;  %99 = vmatpush.msra.mxu1 %v90_v12  ;;  %v158_v34 = vld [vmem:[%s306_s2] ss:$0 sm:$0xff] }
   0xe   :  { %132 = vmatpush.msra.mxu2 %v41_v9  ;;  %58 = vmatpush.msra.mxu0 %v41_v9  ;;  %v159_v41 = vld [vmem:[%s308_s4] ss:$0 sm:$0xff] }
   0xf   :  { %147 = vmatpush.msra.mxu3 %v89_v14  ;;  %100 = vmatpush.msra.mxu1 %v89_v14 }
  0x10   :  { %133 = vmatpush.msra.mxu2 %v40_v11  ;;  %59 = vmatpush.msra.mxu0 %v40_v11 }
  0x11   :  { %148 = vmatpush.msra.mxu3 %v88_v16  ;;  %101 = vmatpush.msra.mxu1 %v88_v16 }
  0x12   :  { %134 = vmatpush.msra.mxu2 %v39_v13  ;;  %60 = vmatpush.msra.mxu0 %v39_v13 }
  0x13   :  { %149 = vmatpush.msra.mxu3 %v87_v18  ;;  %102 = vmatpush.msra.mxu1 %v87_v18 }
  0x14   :  { %135 = vmatpush.msra.mxu2 %v38_v15  ;;  %61 = vmatpush.msra.mxu0 %v38_v15 }
  0x15   :  { %150 = vmatpush.msra.mxu3 %v86_v20  ;;  %103 = vmatpush.msra.mxu1 %v86_v20 }
  0x16   :  { %136 = vmatpush.msra.mxu2 %v37_v17  ;;  %62 = vmatpush.msra.mxu0 %v37_v17 }
  0x17   :  { %151 = vmatpush.msra.mxu3 %v85_v22  ;;  %104 = vmatpush.msra.mxu1 %v85_v22 }
  0x18   :  { %137 = vmatpush.msra.mxu2 %v36_v19  ;;  %63 = vmatpush.msra.mxu0 %v36_v19 }
  0x19   :  { %152 = vmatpush.msra.mxu3 %v84_v24  ;;  %105 = vmatpush.msra.mxu1 %v84_v24 }
  0x1a   :  { %138 = vmatpush.msra.mxu2 %v35_v21  ;;  %64 = vmatpush.msra.mxu0 %v35_v21 }
  0x1b   :  { %153 = vmatpush.msra.mxu3 %v83_v26  ;;  %106 = vmatpush.msra.mxu1 %v83_v26 }
  0x1c   :  { %139 = vmatpush.msra.mxu2 %v34_v23  ;;  %65 = vmatpush.msra.mxu0 %v34_v23 }
  0x1d   :  { %154 = vmatpush.msra.mxu3 %v82_v30  ;;  %107 = vmatpush.msra.mxu1 %v82_v30 }
  0x1e   :  { %140 = vmatpush.msra.mxu2 %v33_v25  ;;  %66 = vmatpush.msra.mxu0 %v33_v25 }
  0x1f   :  { %155 = vmatpush.msra.mxu3 %v81_v31  ;;  %108 = vmatpush.msra.mxu1 %v81_v31 }
  0x20   :  { %141 = vmatpush.msra.mxu2 %v32_v27  ;;  %67 = vmatpush.msra.mxu0 %v32_v27 }
  0x21   :  { %71 = vmatmul.f32.vlgmr.msra.gmra.mxu2 %v31_v28  ;;  %68 = vmatmul.f32.vlgmr.msra.gmra.mxu0 %v30_v29 }
  0x22   :  { %156 = vmatpush.msra.mxu3 %v80_v32  ;;  %109 = vmatpush.msra.mxu1 %v80_v32 }
  0x24   :  { %157 = vmatpush.msra.mxu3 %v79_v33  ;;  %110 = vmatpush.msra.mxu1 %v79_v33 }
  0x9e   :  { %v69_v35 = vpop.f32.mrf.mxu0 }
  0x9f   :  { %v70_v36 = vadd.f32 %v158_v34, %v69_v35 }
  0xa1   :  { %v75_v37 = vmax.f32 %v70_v36, 0.0 }
  0xa3   :  { %111 = vmatmul.f32.vlgmr.msra.gmra.mxu1 %v75_v37 }
  0xa4   :  { %v72_v38 = vpop.f32.mrf.mxu2 }
  0xa5   :  { %v73_v39 = vadd.f32 %v158_v34, %v72_v38 }
  0xa7   :  { %v76_v40 = vmax.f32 %v73_v39, 0.0 }
  0xa9   :  { %114 = vmatmul.f32.vlgmr.msra.gmra.mxu3 %v76_v40 }
 0x120   :  { %v112_v42 = vpop.f32.mrf.mxu1 }
 0x121   :  { %v118_v43 = vadd.f32 %v159_v41, %v112_v42 }
 0x123   :  { %120 = vst [vmem:[%s309_s5] sm:$0xff] %v118_v43 }
 0x12c   :  { %v115_v44 = vpop.f32.mrf.mxu3 }
 0x12d   :  { %v119_v45 = vadd.f32 %v159_v41, %v115_v44 }
 0x12f   :  { %121 = vst [vmem:[%s309_s5 + $0x8] sm:$0xff] %v119_v45 }

</bundles_post_ra>
